<compile_context>
chip_gen: v6e
topology: v6e:2x2x1
jax: 0.10.0
libtpu: 0.0.40
codegen_flags: <defaults>
</compile_context>

<pallas_src>
import functools

import jax
import jax.numpy as jnp
from jax.experimental import pallas as pl
from jax.experimental.pallas import tpu as pltpu

_SUBLANE = 8
_LANE = 128
_MAX_ROW_TILE = 8192  # keeps several blocks alive for pipelining / megacore


def _round_up(x, m):
    return (x + m - 1) // m * m


def _device_vmem_bytes():
    """Physical VMEM of the current TPU; conservative 64 MiB fallback."""
    try:
        return int(pltpu.get_tpu_info().vmem_capacity_bytes)
    except Exception:  # not on TPU / API unavailable
        return 64 * 1024 * 1024


def _choose_tiles(rows, hw, itemsize, target_block_bytes):
    """Pick (row_tile, hw_tile, sublane_mult) honoring (8,128)/packing rules."""
    # dtype-packed sublane multiple: 8 (f32), 16 (bf16/f16), 32 (int8/fp8)
    sub = max(_SUBLANE, 32 // max(1, itemsize))

    # ---- spatial tile ---------------------------------------------------
    if sub * hw * itemsize <= target_block_bytes:
        hw_tile = hw  # full spatial extent per block (common case)
    else:
        # Padded multiple-of-128 chunk; the tail chunk is lane-masked in the
        # kernel, so no exact-divisor requirement and uniform block sizes.
        hw_tile = max(_LANE,
                      (target_block_bytes // (sub * itemsize)) // _LANE * _LANE)
        hw_tile = min(hw_tile, _round_up(hw, _LANE))

    # ---- row tile (dtype-packed multiple, or full dim when rows is tiny) --
    if rows <= sub:
        row_tile = rows
    else:
        row_tile = max(sub,
                       (target_block_bytes // (hw_tile * itemsize)) // sub * sub)
        row_tile = min(row_tile, _MAX_ROW_TILE, _round_up(rows, sub))
    return row_tile, hw_tile, sub


def _int_pow(x, n):
    """x**n for a Python int n >= 1 via binary exponentiation (VPU only)."""
    n = int(n)
    result = None
    base = x
    while n > 0:
        if n & 1:
            result = base if result is None else result * base
        n >>= 1
        if n:
            base = base * base
    return result


def _gem_kernel(p_ref, x_ref, o_ref, acc_ref, *,
                eps, inv_hw, p_static, hw, hw_tile):
    # p_ref  : SMEM (1,)               float32  (learnable exponent)
    # x_ref  : VMEM (row_tile, hw_tile)
    # o_ref  : VMEM (row_tile, 1)
    # acc_ref: VMEM (row_tile, 1)      float32  (partial sums of x^p)
    k = pl.program_id(1)

    @pl.when(k == 0)
    def _init():
        acc_ref[...] = jnp.zeros_like(acc_ref)

    x = x_ref[...].astype(jnp.float32)
    xc = jnp.maximum(x, eps)  # clamp(min=eps) -> positivity for log-based pow

    if p_static is not None:
        # Compile-time integer exponent: pure VPU multiplies, no EUP work.
        xp = _int_pow(xc, p_static)
    else:
        p = p_ref[0]
        xp = jnp.exp(p * jnp.log(xc))  # x^p for a runtime scalar p

    if hw % hw_tile != 0:
        # Padded tail chunk: zero the out-of-range lanes before reducing.
        col = jax.lax.broadcasted_iota(jnp.int32, xp.shape, 1)
        valid = (k * hw_tile + col) < hw
        xp = jnp.where(valid, xp, 0.0)

    acc_ref[...] += jnp.sum(xp, axis=-1, keepdims=True)

    @pl.when(k == pl.num_programs(1) - 1)
    def _finalize():
        m = acc_ref[...] * inv_hw  # mean over the full spatial extent
        if p_static is not None:
            out = jnp.exp(jnp.log(m) * (1.0 / float(p_static)))
        else:
            inv_p = 1.0 / p_ref[0]
            out = jnp.exp(jnp.log(m) * inv_p)
        o_ref[...] = out.astype(o_ref.dtype)


def image_gem(x, p, eps=1e-6, p_static=None, target_block_bytes=None):
    """GeM pooling. x: (b, c, h, w); p: (1,) float. Returns (b, c).

    p_static: optional Python int; enables the exp/log-free fast path (caller
    guarantees it equals the runtime parameter, e.g. the GeM default p=3).
    Prefer it on v7x where the runtime-p EUP path can become the bottleneck.
    """
    assert x.ndim == 4
    b, c, h, w = x.shape
    rows, hw = b * c, h * w
    xf = x.reshape(rows, hw)

    itemsize = x.dtype.itemsize
    device_vmem = _device_vmem_bytes()
    if target_block_bytes is None:
        # 16 MiB on 128-MiB v5e/v6e, 8 MiB on 64-MiB v7x; 2x double-buffered
        # input blocks stay well under half of physical VMEM.
        target_block_bytes = min(16 * 1024 * 1024, device_vmem // 8)

    row_tile, hw_tile, _ = _choose_tiles(rows, hw, itemsize, target_block_bytes)
    grid = (pl.cdiv(rows, row_tile), pl.cdiv(hw, hw_tile))

    block_bytes = row_tile * hw_tile * itemsize
    vmem_limit = int(min(device_vmem,
                         max(32 * 1024 * 1024, 4 * block_bytes)))

    # Advisory cost estimate: memory-bound streaming reduction.
    n_elem = rows * hw
    if p_static is not None:
        flops = n_elem * (3 + int(p_static).bit_length())
        transcendentals = 2 * rows           # finalize log/exp only
    else:
        flops = n_elem * 4
        transcendentals = 2 * n_elem + 2 * rows
    cost = pl.CostEstimate(
        flops=flops,
        transcendentals=transcendentals,
        bytes_accessed=n_elem * itemsize + rows * itemsize + 4,
    )

    kernel = functools.partial(
        _gem_kernel, eps=float(eps), inv_hw=1.0 / float(hw),
        p_static=p_static, hw=hw, hw_tile=hw_tile)

    out = pl.pallas_call(
        kernel,
        out_shape=jax.ShapeDtypeStruct((rows, 1), x.dtype),
        grid=grid,
        in_specs=[
            pl.BlockSpec(memory_space=pltpu.SMEM),                    # p scalar
            pl.BlockSpec((row_tile, hw_tile), lambda i, k: (i, k)),   # x rows
        ],
        out_specs=pl.BlockSpec((row_tile, 1), lambda i, k: (i, 0)),
        scratch_shapes=[pltpu.VMEM((row_tile, 1), jnp.float32)],
        compiler_params=pltpu.CompilerParams(
            dimension_semantics=("parallel", "arbitrary"),
            vmem_limit_bytes=vmem_limit,
        ),
        cost_estimate=cost,
    )(p.astype(jnp.float32), xf)
    return out.reshape(b, c)


def image_gem_ref(x, p, eps=1e-6):
    """Pure-JAX reference mirroring the PyTorch forward."""
    pv = p[0]
    xc = jnp.maximum(x.astype(jnp.float32), eps)
    m = jnp.mean(xc ** pv, axis=(-2, -1))
    return (m ** (1.0 / pv)).astype(x.dtype)


if __name__ == "__main__":
    key = jax.random.PRNGKey(0)

    # Deterministic parameter init (matches nn.Parameter(torch.ones(1) * 3)).
    p = jnp.ones((1,), dtype=jnp.float32) * 3.0

    # 1) Spec-sized input (single-block path), runtime-p.
    b, c, h, w = 2, 4, 16, 16
    x = jax.random.normal(key, (b, c, h, w), dtype=jnp.float32)
    out = jax.block_until_ready(image_gem(x, p))
    ref = image_gem_ref(x, p)
    assert out.shape == (b, c)
    assert jnp.allclose(out, ref, rtol=1e-4, atol=1e-5), (out, ref)

    # 1b) Compile-time integer-p fast path (common GeM default p=3).
    out_fast = jax.block_until_ready(image_gem(x, p, p_static=3))
    assert jnp.allclose(out_fast, ref, rtol=1e-4, atol=1e-5), (out_fast, ref)

    # 2) Typical GeM head shape (large b*c, 7x7) -> row-block parallel axis;
    #    also exercises padded rows (rows = 8*500 not a multiple of row_tile).
    b2, c2, h2, w2 = 8, 500, 7, 7
    x2 = jax.random.normal(jax.random.PRNGKey(1), (b2, c2, h2, w2), jnp.float32)
    out2 = jax.block_until_ready(image_gem(x2, p, p_static=3))
    ref2 = image_gem_ref(x2, p)
    assert jnp.allclose(out2, ref2, rtol=1e-4, atol=1e-5), (out2, ref2)

    # 3) Forced spatial chunking with a non-multiple-of-128 h*w (30*30=900)
    #    -> exercises the reduction-axis accumulator and the masked tail chunk.
    b3, c3, h3, w3 = 2, 8, 30, 30
    x3 = jax.random.normal(jax.random.PRNGKey(2), (b3, c3, h3, w3), jnp.float32)
    out3 = jax.block_until_ready(image_gem(x3, p, target_block_bytes=8 * 1024))
    ref3 = image_gem_ref(x3, p)
    assert jnp.allclose(out3, ref3, rtol=1e-4, atol=1e-5), (out3, ref3)

    # 4) bf16 activations -> exercises the 16-row packed-sublane tile choice.
    b4, c4, h4, w4 = 4, 256, 7, 7
    x4 = jax.random.normal(jax.random.PRNGKey(3), (b4, c4, h4, w4),
                           jnp.bfloat16)
    out4 = jax.block_until_ready(image_gem(x4, p, p_static=3))
    ref4 = image_gem_ref(x4, p)
    assert jnp.allclose(out4.astype(jnp.float32), ref4.astype(jnp.float32),
                        rtol=2e-2, atol=2e-2), (out4, ref4)

    print("KERNEL_OK")
</pallas_src>

<mosaic_0001>
module attributes {stable_mosaic.version = 11 : i64} {
  func.func @_gem_kernel(%arg0: i32, %arg1: i32, %arg2: memref<1xf32, #tpu.memory_space<smem>>, %arg3: memref<8x256xf32, #tpu.memory_space<vmem>>, %arg4: memref<8x1xf32, #tpu.memory_space<vmem>>, %arg5: memref<8x1xf32, #tpu.memory_space<vmem>>) attributes {dimension_semantics = [#tpu.dimension_semantics<parallel>, #tpu.dimension_semantics<arbitrary>], iteration_bounds = array<i64: 1, 1>, scalar_prefetch = 0 : i64, scratch_operands = 1 : i64, tpu.core_type = #tpu.core_type<tc>, window_params = [{transform_indices = @transform_0, window_bounds = array<i64: 1>}, {transform_indices = @transform_1, window_bounds = array<i64: 8, 256>}, {transform_indices = @transform_2, window_bounds = array<i64: 8, 1>}]} {
    %c0_i32 = arith.constant 0 : i32
    %0 = arith.cmpi eq, %arg1, %c0_i32 : i32
    %1 = arith.extui %0 : i1 to i32
    %c0_i32_0 = arith.constant 0 : i32
    %2 = arith.cmpi ne, %1, %c0_i32_0 : i32
    scf.if %2 {
      %cst_10 = arith.constant 0.000000e+00 : f32
      %19 = vector.broadcast %cst_10 : f32 to vector<8x1xf32>
      %c0_11 = arith.constant 0 : index
      %c0_12 = arith.constant 0 : index
      %20 = vector.load %arg5[%c0_11, %c0_12] : memref<8x1xf32, #tpu.memory_space<vmem>>, vector<8x1xf32>
      tpu.vector_store %arg5[%c0_11, %c0_12], %19 {strides = array<i32>} : memref<8x1xf32, #tpu.memory_space<vmem>>, vector<8x1xf32>,
    } else {
    }
    %c0 = arith.constant 0 : index
    %c0_1 = arith.constant 0 : index
    %3 = vector.load %arg3[%c0, %c0_1] : memref<8x256xf32, #tpu.memory_space<vmem>>, vector<8x256xf32>
    %cst = arith.constant 9.99999997E-7 : f32
    %4 = vector.broadcast %cst : f32 to vector<8x256xf32>
    %5 = arith.maximumf %3, %4 : vector<8x256xf32>
    %c0_2 = arith.constant 0 : index
    %6 = memref.load %arg2[%c0_2] : memref<1xf32, #tpu.memory_space<smem>>
    %7 = math.log %5 : vector<8x256xf32>
    %8 = vector.broadcast %6 : f32 to vector<8x256xf32>
    %9 = arith.mulf %8, %7 : vector<8x256xf32>
    %10 = math.exp %9 : vector<8x256xf32>
    %c0_3 = arith.constant 0 : index
    %c0_4 = arith.constant 0 : index
    %11 = vector.load %arg5[%c0_3, %c0_4] : memref<8x1xf32, #tpu.memory_space<vmem>>, vector<8x1xf32>
    %cst_5 = arith.constant dense<0.000000e+00> : vector<8xf32>
    %12 = vector.multi_reduction <add>, %10, %cst_5 [1] : vector<8x256xf32> to vector<8xf32>
    %13 = vector.shape_cast %12 : vector<8xf32> to vector<8x1xf32>
    %14 = arith.addf %11, %13 : vector<8x1xf32>
    %c0_6 = arith.constant 0 : index
    %c0_7 = arith.constant 0 : index
    %15 = vector.load %arg5[%c0_6, %c0_7] : memref<8x1xf32, #tpu.memory_space<vmem>>, vector<8x1xf32>
    tpu.vector_store %arg5[%c0_6, %c0_7], %14 {strides = array<i32>} : memref<8x1xf32, #tpu.memory_space<vmem>>, vector<8x1xf32>,
    %c0_i32_8 = arith.constant 0 : i32
    %16 = arith.cmpi eq, %arg1, %c0_i32_8 : i32
    %17 = arith.extui %16 : i1 to i32
    %c0_i32_9 = arith.constant 0 : i32
    %18 = arith.cmpi ne, %17, %c0_i32_9 : i32
    scf.if %18 {
      %c0_10 = arith.constant 0 : index
      %c0_11 = arith.constant 0 : index
      %19 = vector.load %arg5[%c0_10, %c0_11] : memref<8x1xf32, #tpu.memory_space<vmem>>, vector<8x1xf32>
      %cst_12 = arith.constant 3.906250e-03 : f32
      %20 = vector.broadcast %cst_12 : f32 to vector<8x1xf32>
      %21 = arith.mulf %19, %20 : vector<8x1xf32>
      %c0_13 = arith.constant 0 : index
      %22 = memref.load %arg2[%c0_13] : memref<1xf32, #tpu.memory_space<smem>>
      %cst_14 = arith.constant 1.000000e+00 : f32
      %23 = arith.divf %cst_14, %22 : f32
      %24 = math.log %21 : vector<8x1xf32>
      %25 = vector.broadcast %23 : f32 to vector<8x1xf32>
      %26 = arith.mulf %24, %25 : vector<8x1xf32>
      %27 = math.exp %26 : vector<8x1xf32>
      %c0_15 = arith.constant 0 : index
      %c0_16 = arith.constant 0 : index
      %28 = vector.load %arg4[%c0_15, %c0_16] : memref<8x1xf32, #tpu.memory_space<vmem>>, vector<8x1xf32>
      tpu.vector_store %arg4[%c0_15, %c0_16], %27 {strides = array<i32>} : memref<8x1xf32, #tpu.memory_space<vmem>>, vector<8x1xf32>,
    } else {
    }
    return
  }
  func.func @transform_0(%arg0: i32, %arg1: i32) -> i32 {
    %c0_i32 = arith.constant 0 : i32
    %c0_i32_0 = arith.constant 0 : i32
    return %c0_i32 : i32
  }
  func.func @transform_1(%arg0: i32, %arg1: i32) -> (i32, i32) {
    %c0_i32 = arith.constant 0 : i32
    return %arg0, %arg1 : i32, i32
  }
  func.func @transform_2(%arg0: i32, %arg1: i32) -> (i32, i32) {
    %c0_i32 = arith.constant 0 : i32
    %c0_i32_0 = arith.constant 0 : i32
    return %arg0, %c0_i32 : i32, i32
  }
}

</mosaic_0001>

<bundles_post_ra>
// kernel: tpu_custom_call.1
= control target key start
LH: loop header
LB: loop body
LE: loop exit
PB: predicated region body
PF: predicated region fallthrough
CT: control target
= control target key end

     0   :  { %8 = vsyncpa [#allocation5], 0  ;;  %s114_s9 = smov [#allocation4]   ;;  %s143_s0 = inlined_call_operand.<no memory space> [shape: f32[1], index: 0, kind: input, shape index: {}]   ;;  %s144_s1 = inlined_call_operand.hbm [shape: f32[8,256], index: 1, kind: input, shape index: {}]   ;;  %s145_s2 = inlined_call_operand.vmem [shape: f32[8,1], index: 2, kind: output, shape index: {}]  }
   0x1   :  { %s17_s10 = sshll.u32 %s114_s9, 4  ;;  %s18_s10 = int_to_ptr.vmem [resolvable:$true] %s17_s10 }
   0x2   :  { %s100_s11 = scalar_lea.vmem %s18_s10, 256  ;;  %p105_p1 = scmp.lt.s32.totalorder %s18_s10, %s18_s10 }
   0x3   :  { %p101_p0 = scmp.ne.s32.totalorder %s18_s10, %s100_s11  ;;  %p106_p2 = scmp.lt.s32.totalorder %s100_s11, %s100_s11 }
   0x5   :  { %p107_p3 = por %p106_p2, %p105_p1 }
   0x7   :  { %p108_p4 = pnand %p107_p3, %p101_p0 }
   0x9   :  { %111 = shalt.err (!%p108_p4)
}
   0xa   :  { %20 = dma.hbm_to_vmem [thread:$0]  %s144_s1, 256, %s18_s10, [#allocation5]  }
   0xb   :  { %112 = dma.done.wait [#allocation5], 256  }
   0xc   :  { %113 = vsyncadd [#allocation5], 4294967040  ;;  %vm28_vm0 = vcmask 7168   ;;  %v39_v0 = vstv %s143_s0  ;;  %v115_v1 = vmov 0.0   ;;  %v30_v2 = vld [vmem:[#allocation4] sm:$0xff]  ;;  %v31_v3 = vld [vmem:[#allocation4 + $0x8] sm:$0xff] }
   0xd   :  { %29 = vst.msk [vmem:[#allocation2] sm:$0xff] %vm28_vm0, %v115_v1  ;;  %78 = vrcp.f32 %v39_v0  ;;  %v32_v4 = vmax.f32 %v30_v2, 1e-06  ;;  %v33_v5 = vmax.f32 %v31_v3, 1e-06 }
   0xf   :  { %80 = vlog2.f32 %v32_v4 }
  0x10   :  { %82 = vlog2.f32 %v33_v5 }
  0x14   :  { %v46_v18 = vld [vmem:[#allocation2] sm:$0xff] }
  0x1a   :  { %v79_v6 = vpop.eup %78 }
  0x1b   :  { %74 = vpush %v79_v6 }
  0x1c   :  { %v81_v7 = vpop.eup %80 }
  0x1d   :  { %v83_v8 = vpop.eup %82  ;;  %v36_v9 = vmul.f32 0.6931472, %v81_v7 }
  0x1e   :  { %v38_v10 = vmul.f32 0.6931472, %v83_v8 }
  0x1f   :  { %v40_v11 = vmul.f32 %v39_v0, %v36_v9 }
  0x20   :  { %v41_v12 = vmul.f32 %v39_v0, %v38_v10 }
  0x21   :  { %v42_v13 = vmul.f32 1.442695, %v40_v11 }
  0x22   :  { %v44_v14 = vmul.f32 1.442695, %v41_v12 }
  0x23   :  { %84 = vpow2.f32 %v42_v13 }
  0x24   :  { %86 = vpow2.f32 %v44_v14 }
  0x30   :  { %v85_v15 = vpop.eup %84 }
  0x31   :  { %v87_v16 = vpop.eup %86 }
  0x32   :  { %v47_v17 = vadd.f32 %v87_v16, %v85_v15 }
  0x34   :  { %48 = vadd.xlane.f32.xlu0 %v47_v17 }
  0x4c   :  { %s75_s0 = spop %74 }
  0x4d   :  { %v64_v24 = vstv %s75_s0 }
  0xbd   :  { %v49_v19 = vpop.xlane.xlu0 %48 }
  0xbe   :  { %v50_v20 = vadd.f32 %v49_v19, %v46_v18 }
  0xc0   :  { %52 = vst.msk [vmem:[#allocation2] sm:$0xff] %vm28_vm0, %v50_v20 }
  0xc7   :  { %v56_v21 = vld [vmem:[#allocation2] sm:$0xff] }
  0xc8   :  { %v57_v22 = vmul.f32 0.00390625, %v56_v21 }
  0xca   :  { %88 = vlog2.f32 %v57_v22 }
  0xd7   :  { %v89_v23 = vpop.eup %88 }
  0xd8   :  { %v63_v25 = vmul.f32 0.6931472, %v89_v23 }
  0xda   :  { %v65_v26 = vmul.f32 %v64_v24, %v63_v25 }
  0xdc   :  { %v66_v27 = vmul.f32 1.442695, %v65_v26 }
  0xde   :  { %90 = vpow2.f32 %v66_v27 }
  0xeb   :  { %v91_v28 = vpop.eup %90 }
  0xec   :  { %68 = vst.msk [vmem:[%s145_s2] sm:$0xff] %vm28_vm0, %v91_v28 }
  0xed   :  { %73 = vsyncpa [#allocation5], 1 }

</bundles_post_ra>
